<compile_context>
chip_gen: v5e
topology: v5e:2x2
jax: 0.10.0
libtpu: 0.0.40
codegen_flags: <defaults>
</compile_context>

<pallas_src>
import functools

import jax
import jax.numpy as jnp
from jax import lax
from jax.experimental import pallas as pl
from jax.experimental.pallas import tpu as pltpu

ALPHA = 0.2          # LeakyReLU negative slope
MASK_VAL = -9e15     # matches -9000000000000000.0 in the PyTorch module
LANE = 128
# TODO(synk): F.dropout(attention, p, training=self.training) is identity in
# eval mode; dropout is intentionally omitted (inference semantics).


def _round_up(x, m):
    return ((x + m - 1) // m) * m


# ---------------------------------------------------------------------------
# Kernel 1: per-batch projection   Wh = h @ W ,  f = Wh @ [a1 a2]
# ---------------------------------------------------------------------------
def gat_project_kernel(h_ref, w_ref, a_ref, wh_ref, f_ref):
    wh = jnp.dot(h_ref[0], w_ref[...], preferred_element_type=jnp.float32)
    wh_ref[0] = wh.astype(jnp.bfloat16)      # bf16 feed for the attn @ Wh matmul
    f_ref[0] = jnp.dot(wh, a_ref[...], preferred_element_type=jnp.float32)


# ---------------------------------------------------------------------------
# Kernel 2: per (batch, row-tile) masked softmax + attn @ Wh
# ---------------------------------------------------------------------------
def gat_attn_kernel(n_real, wh_ref, f1_ref, f2_ref, adj_ref, hprime_ref, attn_ref):
    wh = wh_ref[0]        # [N_pad, F_pad]  bf16 (per batch, block revisited)
    f1 = f1_ref[0]        # [TQ, 1]         f32   query-side logit half
    f2 = f2_ref[0]        # [1, N_pad]      f32   key-side logit half

    # e[i, j] = f1[i] + f2[j]  -- exact VPU broadcast-add (no MXU, no constants)
    e = f1 + f2                                          # [TQ, N_pad]
    e = jnp.where(e > 0, e, ALPHA * e)                   # LeakyReLU
    e = jnp.where(adj_ref[0] > 0, e, MASK_VAL)           # int8 adjacency mask

    # Row-wise softmax in f32.
    # TODO(synk): on v6e/v7x the exp could run in bf16 for ~2x EUP throughput;
    # kept f32 unconditionally because v5e has no bf16 EUP.
    m = jnp.max(e, axis=-1, keepdims=True)
    p = jnp.exp(e - m)
    # Zero the padded key columns so every row normalizes over real nodes only.
    col = lax.broadcasted_iota(jnp.int32, p.shape, 1)
    p = jnp.where(col < n_real, p, 0.0)
    s = jnp.sum(p, axis=-1, keepdims=True)
    attn = p * (1.0 / s)          # exact reciprocal: returned rows sum to 1

    attn_ref[0] = attn
    # Dominant matmul: bf16 inputs, f32 accumulation (flash-attention style).
    hprime_ref[0] = jnp.dot(attn.astype(jnp.bfloat16), wh,
                            preferred_element_type=jnp.float32)


# ---------------------------------------------------------------------------
# VMEM sizing helpers (generation-aware; no hard 64 MiB clamp on v5e/v6e)
# ---------------------------------------------------------------------------
def _vmem_capacity_bytes():
    try:
        return int(pltpu.get_tpu_info().vmem_capacity_bytes)
    except Exception:      # e.g. interpret mode / info unavailable at trace time
        return 64 << 20    # conservative (v7x-sized) fallback


def _attn_step_bytes(tq, n_pad, f_pad):
    """Double-buffered per-step footprint of the attention kernel."""
    return 2 * (tq * n_pad            # adj tile (int8)
                + 4 * tq * n_pad      # attn tile (f32)
                + 4 * tq * f_pad      # h' tile (f32)
                + 4 * tq              # f1 tile
                + 4 * n_pad           # f2 tile
                + 2 * n_pad * f_pad)  # Wh (bf16, revisited; budgeted x2)


def _vmem_limit(need, cap):
    return int(min(max(need + (16 << 20), 32 << 20), int(cap * 0.85)))


# ---------------------------------------------------------------------------
# Wrapper
# ---------------------------------------------------------------------------
def graph_attention(h, adj, W, a_vec, *, tq=256):
    """h: [B,N,F_in], adj: [B,N,N], W: [F_in,F_out], a_vec: [2*F_out,1]."""
    B, N, F_in = h.shape
    F_out = W.shape[1]

    N_pad = _round_up(N, LANE)        # key/column dim -> lane-dense streams
    F_pad = _round_up(F_out, LANE)    # Wh / h' lane dim -> lane-dense stores

    h32 = jnp.pad(h.astype(jnp.float32), ((0, 0), (0, N_pad - N), (0, 0)))
    W32 = jnp.pad(W.astype(jnp.float32), ((0, 0), (0, F_pad - F_out)))
    # Repack a (2*F_out, 1) -> (F_pad, 2): col0 = a[:F_out], col1 = a[F_out:].
    a_mat = jnp.concatenate([a_vec[:F_out], a_vec[F_out:]], axis=1)
    a_mat = jnp.pad(a_mat.astype(jnp.float32), ((0, F_pad - F_out), (0, 0)))
    # Adjacency only feeds `adj > 0` -> ship as int8 (4x smaller N^2 stream).
    # Padded columns stay 0 so the kernel masks them to MASK_VAL.
    adj_i8 = jnp.pad((adj > 0).astype(jnp.int8),
                     ((0, 0), (0, N_pad - N), (0, N_pad - N)))

    cap = _vmem_capacity_bytes()

    # ---- projection: Wh (bf16) and per-node logit halves f = [f1 f2] -------
    proj_need = 2 * (4 * N_pad * F_in + 4 * F_in * F_pad + 4 * F_pad * 2
                     + 2 * N_pad * F_pad + 4 * N_pad * 2)
    wh_bf16, f = pl.pallas_call(
        gat_project_kernel,
        out_shape=(jax.ShapeDtypeStruct((B, N_pad, F_pad), jnp.bfloat16),
                   jax.ShapeDtypeStruct((B, N_pad, 2), jnp.float32)),
        grid=(B,),
        in_specs=[
            pl.BlockSpec((1, N_pad, F_in), lambda b: (b, 0, 0)),   # h (per batch)
            pl.BlockSpec((F_in, F_pad), lambda b: (0, 0)),         # W
            pl.BlockSpec((F_pad, 2), lambda b: (0, 0)),            # [a1 a2]
        ],
        out_specs=[
            pl.BlockSpec((1, N_pad, F_pad), lambda b: (b, 0, 0)),  # Wh (bf16)
            pl.BlockSpec((1, N_pad, 2), lambda b: (b, 0, 0)),      # f
        ],
        compiler_params=pltpu.CompilerParams(
            dimension_semantics=("parallel",),
            vmem_limit_bytes=_vmem_limit(proj_need, cap),
        ),
    )(h32, W32, a_mat)

    f1 = f[:, :, 0:1]                 # [B, N_pad, 1]  query-side logit halves
    f2 = f[:, :, 1][:, None, :]       # [B, 1, N_pad]  key-side logit halves

    # ---- row-tile size: largest 128-multiple divisor of N_pad that fits ----
    tq_req = max(LANE, (tq // LANE) * LANE)
    TQ = LANE
    for cand in range(tq_req, LANE - 1, -LANE):
        if N_pad % cand == 0 and _attn_step_bytes(cand, N_pad, F_pad) <= int(0.6 * cap):
            TQ = cand
            break
    NT = N_pad // TQ

    grid_spec = pltpu.PrefetchScalarGridSpec(
        num_scalar_prefetch=0,
        grid=(B, NT),
        in_specs=[
            pl.BlockSpec((1, N_pad, F_pad), lambda b, i: (b, 0, 0)),  # Wh (bf16)
            pl.BlockSpec((1, TQ, 1), lambda b, i: (b, i, 0)),         # f1 column
            pl.BlockSpec((1, 1, N_pad), lambda b, i: (b, 0, 0)),      # f2 row
            pl.BlockSpec((1, TQ, N_pad), lambda b, i: (b, i, 0)),     # adj slab
        ],
        out_specs=[
            pl.BlockSpec((1, TQ, F_pad), lambda b, i: (b, i, 0)),     # h'
            pl.BlockSpec((1, TQ, N_pad), lambda b, i: (b, i, 0)),     # attn
        ],
    )
    out_shapes = (
        jax.ShapeDtypeStruct((B, N_pad, F_pad), jnp.float32),
        jax.ShapeDtypeStruct((B, N_pad, N_pad), jnp.float32),
    )
    h_prime, attn = pl.pallas_call(
        functools.partial(gat_attn_kernel, N),
        out_shape=out_shapes,
        grid_spec=grid_spec,
        compiler_params=pltpu.CompilerParams(
            # no cross-step scratch -> both axes are megacore-shardable
            dimension_semantics=("parallel", "parallel"),
            vmem_limit_bytes=_vmem_limit(_attn_step_bytes(TQ, N_pad, F_pad), cap),
        ),
    )(wh_bf16, f1, f2, adj_i8)

    return h_prime[:, :N, :F_out], attn[:, :N, :N]


# ---------------------------------------------------------------------------
# Pure-JAX reference mirroring the PyTorch forward (eval mode)
# ---------------------------------------------------------------------------
def graph_attention_ref(h, adj, W, a_vec):
    F_out = W.shape[1]
    Wh = jnp.einsum("bnf,fo->bno", h, W)
    f1 = Wh @ a_vec[:F_out, 0]            # [B, N]
    f2 = Wh @ a_vec[F_out:, 0]            # [B, N]
    e = f1[:, :, None] + f2[:, None, :]
    e = jnp.where(e > 0, e, ALPHA * e)
    e = jnp.where(adj > 0, e, jnp.full_like(e, MASK_VAL))
    attn = jax.nn.softmax(e, axis=-1)
    h_prime = jnp.einsum("bij,bjo->bio", attn, Wh)
    return h_prime, attn


if __name__ == "__main__":
    B, N, F_in, F_out = 2, 200, 16, 32
    key = jax.random.PRNGKey(0)
    k_h, k_adj, k_w, k_a = jax.random.split(key, 4)

    h = jax.random.normal(k_h, (B, N, F_in), dtype=jnp.float32)

    # random symmetric 0/1 adjacency with self-loops
    adj_rand = jax.random.uniform(k_adj, (B, N, N))
    adj = (adj_rand > 0.5).astype(jnp.float32)
    adj = jnp.maximum(adj, jnp.transpose(adj, (0, 2, 1)))
    adj = jnp.maximum(adj, jnp.eye(N, dtype=jnp.float32)[None])

    # deterministic xavier-uniform-style init
    bw = (6.0 / (F_in + F_out)) ** 0.5
    W = jax.random.uniform(k_w, (F_in, F_out), minval=-bw, maxval=bw,
                           dtype=jnp.float32)
    ba = (6.0 / (2 * F_out + 1)) ** 0.5
    a_vec = jax.random.uniform(k_a, (2 * F_out, 1), minval=-ba, maxval=ba,
                               dtype=jnp.float32)

    # N=200 -> N_pad=256, TQ=128: exercises row tiling, 128-lane padding and
    # the final un-padding slices.
    h_prime, attn = graph_attention(h, adj, W, a_vec, tq=128)
    jax.block_until_ready((h_prime, attn))

    h_prime_ref, attn_ref = graph_attention_ref(h, adj, W, a_vec)

    assert attn.shape == (B, N, N) and h_prime.shape == (B, N, F_out)
    # tolerances cover the bf16 attn@Wh and default-precision matmuls on both
    # the kernel and the XLA-reference sides
    assert jnp.allclose(attn, attn_ref, atol=5e-3, rtol=5e-3), \
        float(jnp.max(jnp.abs(attn - attn_ref)))
    assert jnp.allclose(h_prime, h_prime_ref, atol=2e-2, rtol=2e-2), \
        float(jnp.max(jnp.abs(h_prime - h_prime_ref)))

    print("KERNEL_OK")
</pallas_src>

<mosaic_0001>
module attributes {stable_mosaic.version = 11 : i64} {
  func.func @gat_project_kernel(%arg0: i32, %arg1: memref<1x256x16xf32, #tpu.memory_space<vmem>>, %arg2: memref<16x128xf32, #tpu.memory_space<vmem>>, %arg3: memref<128x2xf32, #tpu.memory_space<vmem>>, %arg4: memref<1x256x128xbf16, #tpu.memory_space<vmem>>, %arg5: memref<1x256x2xf32, #tpu.memory_space<vmem>>) attributes {dimension_semantics = [#tpu.dimension_semantics<parallel>], iteration_bounds = array<i64: 2>, scalar_prefetch = 0 : i64, scratch_operands = 0 : i64, tpu.core_type = #tpu.core_type<tc>, window_params = [{transform_indices = @transform_0, window_bounds = array<i64: 1, 256, 16>}, {pipeline_mode = #tpu.pipeline_mode<synchronous>, transform_indices = @transform_1, window_bounds = array<i64: 16, 128>}, {pipeline_mode = #tpu.pipeline_mode<synchronous>, transform_indices = @transform_2, window_bounds = array<i64: 128, 2>}, {transform_indices = @transform_3, window_bounds = array<i64: 1, 256, 128>}, {transform_indices = @transform_4, window_bounds = array<i64: 1, 256, 2>}]} {
    %c0 = arith.constant 0 : index
    %c0_0 = arith.constant 0 : index
    %c0_1 = arith.constant 0 : index
    %0 = vector.load %arg1[%c0, %c0_0, %c0_1] : memref<1x256x16xf32, #tpu.memory_space<vmem>>, vector<1x256x16xf32>
    %1 = vector.shape_cast %0 : vector<1x256x16xf32> to vector<256x16xf32>
    %c0_2 = arith.constant 0 : index
    %c0_3 = arith.constant 0 : index
    %2 = vector.load %arg2[%c0_2, %c0_3] : memref<16x128xf32, #tpu.memory_space<vmem>>, vector<16x128xf32>
    %cst = arith.constant dense<0.000000e+00> : vector<256x128xf32>
    %3 = tpu.matmul %1, %2, %cst {dimension_numbers = #tpu.dot_dimension_numbers<[1], [0], [0], [1], [0, 0, 1, 1], [], []>} : vector<256x16xf32>, vector<16x128xf32>, vector<256x128xf32> -> vector<256x128xf32>
    %4 = arith.truncf %3 : vector<256x128xf32> to vector<256x128xbf16>
    %c0_4 = arith.constant 0 : index
    %c0_5 = arith.constant 0 : index
    %c0_6 = arith.constant 0 : index
    %5 = vector.load %arg4[%c0_4, %c0_5, %c0_6] : memref<1x256x128xbf16, #tpu.memory_space<vmem>>, vector<1x256x128xbf16>
    %6 = vector.shape_cast %5 : vector<1x256x128xbf16> to vector<256x128xbf16>
    %7 = vector.shape_cast %4 : vector<256x128xbf16> to vector<1x256x128xbf16>
    tpu.vector_store %arg4[%c0_4, %c0_5, %c0_6], %7 {strides = array<i32>} : memref<1x256x128xbf16, #tpu.memory_space<vmem>>, vector<1x256x128xbf16>,
    %c0_7 = arith.constant 0 : index
    %c0_8 = arith.constant 0 : index
    %8 = vector.load %arg3[%c0_7, %c0_8] : memref<128x2xf32, #tpu.memory_space<vmem>>, vector<128x2xf32>
    %cst_9 = arith.constant dense<0.000000e+00> : vector<256x2xf32>
    %9 = tpu.matmul %3, %8, %cst_9 {dimension_numbers = #tpu.dot_dimension_numbers<[1], [0], [0], [1], [0, 0, 1, 1], [], []>} : vector<256x128xf32>, vector<128x2xf32>, vector<256x2xf32> -> vector<256x2xf32>
    %c0_10 = arith.constant 0 : index
    %c0_11 = arith.constant 0 : index
    %c0_12 = arith.constant 0 : index
    %10 = vector.load %arg5[%c0_10, %c0_11, %c0_12] : memref<1x256x2xf32, #tpu.memory_space<vmem>>, vector<1x256x2xf32>
    %11 = vector.shape_cast %10 : vector<1x256x2xf32> to vector<256x2xf32>
    %12 = vector.shape_cast %9 : vector<256x2xf32> to vector<1x256x2xf32>
    tpu.vector_store %arg5[%c0_10, %c0_11, %c0_12], %12 {strides = array<i32>} : memref<1x256x2xf32, #tpu.memory_space<vmem>>, vector<1x256x2xf32>,
    return
  }
  func.func @transform_0(%arg0: i32) -> (i32, i32, i32) {
    %c0_i32 = arith.constant 0 : i32
    %c0_i32_0 = arith.constant 0 : i32
    %c0_i32_1 = arith.constant 0 : i32
    return %arg0, %c0_i32, %c0_i32_0 : i32, i32, i32
  }
  func.func @transform_1(%arg0: i32) -> (i32, i32) {
    %c0_i32 = arith.constant 0 : i32
    %c0_i32_0 = arith.constant 0 : i32
    %c0_i32_1 = arith.constant 0 : i32
    return %c0_i32, %c0_i32_0 : i32, i32
  }
  func.func @transform_2(%arg0: i32) -> (i32, i32) {
    %c0_i32 = arith.constant 0 : i32
    %c0_i32_0 = arith.constant 0 : i32
    %c0_i32_1 = arith.constant 0 : i32
    return %c0_i32, %c0_i32_0 : i32, i32
  }
  func.func @transform_3(%arg0: i32) -> (i32, i32, i32) {
    %c0_i32 = arith.constant 0 : i32
    %c0_i32_0 = arith.constant 0 : i32
    %c0_i32_1 = arith.constant 0 : i32
    return %arg0, %c0_i32, %c0_i32_0 : i32, i32, i32
  }
  func.func @transform_4(%arg0: i32) -> (i32, i32, i32) {
    %c0_i32 = arith.constant 0 : i32
    %c0_i32_0 = arith.constant 0 : i32
    %c0_i32_1 = arith.constant 0 : i32
    return %arg0, %c0_i32, %c0_i32_0 : i32, i32, i32
  }
}

</mosaic_0001>

<bundles_post_ra>
// kernel: tpu_custom_call.1
= control target key start
LH: loop header
LB: loop body
LE: loop exit
PB: predicated region body
PF: predicated region fallthrough
CT: control target
= control target key end

     0   :  { %10 = vsyncpa [#allocation3], 0  ;;  %s1404_s0 = inlined_call_operand.vmem [shape: f32[2,256,16], index: 0, kind: input, shape index: {}]   ;;  %s1405_s1 = inlined_call_operand.vmem [shape: f32[16,128], index: 1, kind: input, shape index: {}]   ;;  %s1406_s2 = inlined_call_operand.vmem [shape: f32[128,2], index: 2, kind: input, shape index: {}]   ;;  %s1407_s3 = inlined_call_operand.hbm [shape: bf16[2,256,128], index: 3, kind: output, shape index: {0}]   ;;  %s1408_s4 = inlined_call_operand.vmem [shape: f32[2,256,2], index: 4, kind: output, shape index: {1}]  }
   0x1   :  { %12 = vsyncpa [#allocation3 + $0x1], 0  ;;  %s1100_s15 = smov 0   ;;  %s1102_s16 = smov 0  }
   0x2   :  { %s1104_s17 = smov 0   ;;  %s1106_s18 = smov 0  }
   0x3 LB: > { %s1121_s19 = sadd.s32 4294967295, %s1071_s18   ;;  %s790_s20 = sadd.s32 4294967294, %s1071_s18   ;;  %s1071_s18 = sphi %s1106_s18, %s1414_s18   ;;  %s1067_s17 = sphi %s1104_s17, %s1413_s17   ;;  %s1063_s16 = sphi %s1102_s16, %s1412_s16   ;;  %s1059_s15 = sphi %s1100_s15, %s1411_s15  }
   0x4   : > { %s1125_s21 = sadd.s32 1, %s1071_s18   ;;  %s93_s22 = sadd.s32 1, %s1067_s17 }
   0x5   : > { %s90_s23 = ssub.s32 %s1071_s18, %s1125_s21  ;;  %p103_p0 = scmp.ne.s32.totalorder %s1067_s17, %s1063_s16 }
   0x6   : > { %p91_p1 = scmp.eq.s32.totalorder %s90_s23, 0  ;;  %p104_p2 = scmp.eq.s32.totalorder %s1121_s19, 1 }
   0x7   : > { %p109_p3 = scmp.ne.s32.totalorder %s1063_s16, %s1059_s15  ;;  %p110_p4 = scmp.eq.s32.totalorder %s790_s20, 1 }
   0x8   : > { %s1136_s24 = scalar_select %p91_p1, %s1067_s17, %s93_s22  }
   0x9   : > { %p1138_p5 = por %p104_p2, %p103_p0  ;;  %p1142_p6 = por %p110_p4, %p109_p3 }
   0xa   : > { %p793_p7 = scmp.ge.s32.totalorder %s1071_s18, 1  ;;  %p168_p8 = scmp.lt.s32.totalorder %s1071_s18, 3 }
   0xc   : > { %p169_p9 = pnand %p793_p7, %p168_p8 }
   0xd   : > { %p199_p10 = scmp.lt.s32.totalorder (!%p169_p9), %s1121_s19, 1  ;;  %s189_s14 = sand.u32 (!%p169_p9), 1, %s1063_s16  }
   0xe   : > { %172 = sbr.rel (%p169_p9) target bundleno = 515 (0x203), region = 32  ;;  %s794_s20 = sshll.u32 (!%p169_p9), %s189_s14, 7 }
   0xf   : > { %s1266_s22 = scalar_lea.vmem (!%p169_p9), [#allocation2], %s794_s20  ;;  %s680_s8 = scalar_lea.sflag (!%p169_p9), [#allocation3], %s189_s14 }
  0x10   : > { %s697_s30 = sshll.u32 (!%p169_p9), %s1266_s22, 4  ;;  %s1029_s13 = scalar_lea.hbm (!%p169_p9), %s1407_s3, 256  ;;  %s698_s30 = int_to_ptr.vmem [resolvable:$true] %s697_s30 }
  0x13   : > { %v242_v0 = vld [vmem:[%s1405_s1 + $0x8] sm:$0xff]  ;;  %v241_v1 = vld [vmem:[%s1405_s1] sm:$0xff]  ;;  %s1156_s5 = scalar_select %p199_p10, %s1121_s19, 1  ;;  %vm243_vm0 = vcmask 130048   ;;  %v532_v10 = vld [vmem:[%s1406_s2 + $0x78] sm:$0xff]  ;;  %vm646_vm1 = vcmask 15360  }
  0x14   : > { %354 = vmatpush.msra.mxu0 %v242_v0  ;;  %934 = vmatpush.msra.mxu3 %v242_v0  ;;  %v531_v12 = vld [vmem:[%s1406_s2 + $0x70] sm:$0xff]  ;;  %v530_v13 = vld [vmem:[%s1406_s2 + $0x68] sm:$0xff]  ;;  %v529_v14 = vld [vmem:[%s1406_s2 + $0x60] sm:$0xff] }
  0x15   : > { %s836_s6 = sshll.u32 %s1156_s5, 8  ;;  %533 = vmatpush.msra.mxu1 %v532_v10  ;;  %936 = vmatpush.msra.mxu2 %v532_v10  ;;  %v528_v15 = vld [vmem:[%s1406_s2 + $0x58] sm:$0xff]  ;;  %v527_v17 = vld [vmem:[%s1406_s2 + $0x50] sm:$0xff]  ;;  %v526_v18 = vld [vmem:[%s1406_s2 + $0x48] sm:$0xff]  ;;  %s838_s5 = sshll.u32 %s1121_s19, 7 }
  0x16   : > { %355 = vmatpush.msra.mxu0 %v241_v1  ;;  %935 = vmatpush.msra.mxu3 %v241_v1  ;;  %s1164_s9 = scalar_lea.vmem %s1404_s0, %s836_s6  ;;  %v525_v19 = vld [vmem:[%s1406_s2 + $0x40] sm:$0xff]  ;;  %v524_v20 = vld [vmem:[%s1406_s2 + $0x38] sm:$0xff]  ;;  %v523_v22 = vld [vmem:[%s1406_s2 + $0x30] sm:$0xff]  ;;  %s1298_s27 = scalar_lea.vmem %s1408_s4, %s836_s6 }
  0x17   : > { %v209_v2 = vld [vmem:[%s1164_s9] sm:$0xff]  ;;  %v210_v3 = vld [vmem:[%s1164_s9 + $0x8] sm:$0xff]  ;;  %v211_v4 = vld [vmem:[%s1164_s9 + $0x10] sm:$0xff]  ;;  %534 = vmatpush.msra.mxu1 %v531_v12  ;;  %938 = vmatpush.msra.mxu2 %v531_v12  ;;  %s696_s29 = scalar_lea.hbm %s1407_s3, %s838_s5 }
  0x18   : > { %799 = vmatmul.msk.f32.vlgmr.msra.gmra.mxu0 %vm243_vm0, %v209_v2  ;;  %v212_v5 = vld [vmem:[%s1164_s9 + $0x18] sm:$0xff]  ;;  %v213_v6 = vld [vmem:[%s1164_s9 + $0x20] sm:$0xff]  ;;  %v214_v7 = vld [vmem:[%s1164_s9 + $0x28] sm:$0xff]  ;;  %937 = vmatpush.msrb.mxu3 %v532_v10  ;;  %s699_s7 = sshll.u32 %s696_s29, 4  ;;  %s700_s7 = int_to_ptr.hbm [resolvable:$true] %s699_s7 }
  0x19   : > { %v215_v8 = vld [vmem:[%s1164_s9 + $0x30] sm:$0xff]  ;;  %v216_v9 = vld [vmem:[%s1164_s9 + $0x38] sm:$0xff]  ;;  %v217_v11 = vld [vmem:[%s1164_s9 + $0x40] sm:$0xff]  ;;  %535 = vmatpush.msra.mxu1 %v530_v13  ;;  %940 = vmatpush.msra.mxu2 %v530_v13  ;;  %s1023_s10 = sshra.s32 %s700_s7, 4  ;;  %s1024_s10 = int_to_ptr.hbm [resolvable:$true] %s1023_s10 }
  0x1a   : > { %939 = vmatpush.msrb.mxu3 %v531_v12  ;;  %v218_v16 = vld [vmem:[%s1164_s9 + $0x48] sm:$0xff]  ;;  %v219_v21 = vld [vmem:[%s1164_s9 + $0x50] sm:$0xff]  ;;  %v521_v25 = vld [vmem:[%s1406_s2 + $0x20] sm:$0xff]  ;;  %s1025_s11 = scalar_lea.hbm %s1024_s10, 128  ;;  %p1030_p0 = scmp.lt.s32.totalorder %s1024_s10, %s1407_s3 }
  0x1b   : > { %536 = vmatpush.msra.mxu1 %v529_v14  ;;  %942 = vmatpush.msra.mxu2 %v529_v14  ;;  %v227_v23 = vld [vmem:[%s1164_s9 + $0x90] sm:$0xff]  ;;  %v522_v24 = vld [vmem:[%s1406_s2 + $0x28] sm:$0xff]  ;;  %v520_v26 = vld [vmem:[%s1406_s2 + $0x18] sm:$0xff]  ;;  %p1026_p11 = scmp.ne.s32.totalorder %s1024_s10, %s1025_s11  ;;  %p1031_p1 = scmp.lt.s32.totalorder %s1029_s13, %s1025_s11 }
  0x1c   : > { %941 = vmatpush.msrb.mxu3 %v530_v13  ;;  %v220_v27 = vld [vmem:[%s1164_s9 + $0x58] sm:$0xff]  ;;  %v519_v28 = vld [vmem:[%s1406_s2 + $0x10] sm:$0xff]  ;;  %v518_v30 = vld [vmem:[%s1406_s2 + $0x8] sm:$0xff] }
  0x1d   : > { %537 = vmatpush.msra.mxu1 %v528_v15  ;;  %944 = vmatpush.msra.mxu2 %v528_v15  ;;  %v228_v29 = vld [vmem:[%s1164_s9 + $0x98] sm:$0xff]  ;;  %v517_v31 = vld [vmem:[%s1406_s2] sm:$0xff]  ;;  %v222_v34 = vld [vmem:[%s1164_s9 + $0x68] sm:$0xff]  ;;  %p1027_p12 = pnand %p1026_p11, %p1138_p5  ;;  %p1032_p2 = por %p1031_p1, %p1030_p0 }
  0x1e   : > { %943 = vmatpush.msrb.mxu3 %v529_v14  ;;  %v221_v32 = vld [vmem:[%s1164_s9 + $0x60] sm:$0xff]  ;;  %v230_v35 = vld [vmem:[%s1164_s9 + $0xa8] sm:$0xff]  ;;  %v223_v36 = vld [vmem:[%s1164_s9 + $0x70] sm:$0xff] }
  0x1f   : > { %538 = vmatpush.msra.mxu1 %v527_v17  ;;  %946 = vmatpush.msra.mxu2 %v527_v17  ;;  %v229_v33 = vld [vmem:[%s1164_s9 + $0xa0] sm:$0xff]  ;;  %v231_v37 = vld [vmem:[%s1164_s9 + $0xb0] sm:$0xff]  ;;  %v224_v38 = vld [vmem:[%s1164_s9 + $0x78] sm:$0xff]  ;;  %p1028_p13 = pneg %p1027_p12 }
  0x20   : > { %800 = vmatmul.msk.f32.gmra.mxu0 %vm243_vm0, %v210_v3  ;;  %945 = vmatpush.msrb.mxu3 %v528_v15  ;;  %v232_v39 = vld [vmem:[%s1164_s9 + $0xb8] sm:$0xff]  ;;  %v225_v41 = vld [vmem:[%s1164_s9 + $0x80] sm:$0xff]  ;;  %v226_v44 = vld [vmem:[%s1164_s9 + $0x88] sm:$0xff] }
  0x21   : > { %539 = vmatpush.msra.mxu1 %v526_v18  ;;  %948 = vmatpush.msra.mxu2 %v526_v18  ;;  %v233_v42 = vld [vmem:[%s1164_s9 + $0xc0] sm:$0xff]  ;;  %v234_v46 = vld [vmem:[%s1164_s9 + $0xc8] sm:$0xff]  ;;  %v235_v48 = vld [vmem:[%s1164_s9 + $0xd0] sm:$0xff]  ;;  %p1033_p3 = pnand %p1032_p2, %p1028_p13 }
  0x22   : > { %947 = vmatpush.msrb.mxu3 %v527_v17  ;;  %v236_v51 = vld [vmem:[%s1164_s9 + $0xd8] sm:$0xff]  ;;  %v237_v53 = vld [vmem:[%s1164_s9 + $0xe0] sm:$0xff]  ;;  %v238_v56 = vld [vmem:[%s1164_s9 + $0xe8] sm:$0xff] }
  0x23   : > { %540 = vmatpush.msra.mxu1 %v525_v19  ;;  %950 = vmatpush.msra.mxu2 %v525_v19  ;;  %v239_v58 = vld [vmem:[%s1164_s9 + $0xf0] sm:$0xff]  ;;  %v240_v61 = vld [vmem:[%s1164_s9 + $0xf8] sm:$0xff] }
  0x24   : > { %949 = vmatpush.msrb.mxu3 %v526_v18 }
  0x25   : > { %541 = vmatpush.msra.mxu1 %v524_v20  ;;  %952 = vmatpush.msra.mxu2 %v524_v20 }
  0x26   : > { %951 = vmatpush.msrb.mxu3 %v525_v19 }
  0x27   : > { %542 = vmatpush.msra.mxu1 %v523_v22  ;;  %817 = vmatmul.msk.f32.vlgmr.msra.gmra.mxu3 %vm243_vm0, %v227_v23 }
  0x28   : > { %801 = vmatmul.msk.f32.gmra.mxu0 %vm243_vm0, %v211_v4  ;;  %953 = vmatpush.msrb.mxu3 %v524_v20 }
  0x29   : > { %954 = vmatpush.msra.mxu2 %v523_v22  ;;  %543 = vmatpush.msra.mxu1 %v522_v24 }
  0x2a   : > { %955 = vmatpush.msrb.mxu3 %v523_v22 }
  0x2b   : > { %956 = vmatpush.msra.mxu2 %v522_v24  ;;  %544 = vmatpush.msra.mxu1 %v521_v25 }
  0x2c   : > { %957 = vmatpush.msrb.mxu3 %v522_v24 }
  0x2d   : > { %958 = vmatpush.msra.mxu2 %v521_v25  ;;  %545 = vmatpush.msra.mxu1 %v520_v26 }
  0x2e   : > { %959 = vmatpush.msrb.mxu3 %v521_v25 }
  0x2f   : > { %960 = vmatpush.msra.mxu2 %v520_v26  ;;  %546 = vmatpush.msra.mxu1 %v519_v28 }
  0x30   : > { %802 = vmatmul.msk.f32.gmra.mxu0 %vm243_vm0, %v212_v5  ;;  %818 = vmatmul.msk.f32.gmra.mxu3 %vm243_vm0, %v228_v29 }
  0x31   : > { %962 = vmatpush.msra.mxu2 %v519_v28  ;;  %961 = vmatpush.msrb.mxu3 %v520_v26 }
  0x32   : > { %547 = vmatpush.msra.mxu1 %v518_v30 }
  0x33   : > { %964 = vmatpush.msra.mxu2 %v518_v30  ;;  %963 = vmatpush.msrb.mxu3 %v519_v28 }
  0x34   : > { %548 = vmatpush.msra.mxu1 %v517_v31 }
  0x35   : > { %966 = vmatpush.msra.mxu2 %v517_v31  ;;  %965 = vmatpush.msrb.mxu3 %v518_v30 }
  0x37   : > { %967 = vmatpush.msrb.mxu3 %v517_v31 }
  0x38   : > { %803 = vmatmul.msk.f32.gmra.mxu0 %vm243_vm0, %v213_v6  ;;  %819 = vmatmul.msk.f32.gmra.mxu3 %vm243_vm0, %v229_v33 }
  0x40   : > { %804 = vmatmul.msk.f32.gmra.mxu0 %vm243_vm0, %v214_v7  ;;  %820 = vmatmul.msk.f32.gmra.mxu3 %vm243_vm0, %v230_v35 }
  0x48   : > { %805 = vmatmul.msk.f32.gmra.mxu0 %vm243_vm0, %v215_v8  ;;  %821 = vmatmul.msk.f32.gmra.mxu3 %vm243_vm0, %v231_v37 }
  0x50   : > { %806 = vmatmul.msk.f32.gmra.mxu0 %vm243_vm0, %v216_v9  ;;  %822 = vmatmul.msk.f32.gmra.mxu3 %vm243_vm0, %v232_v39 }
  0x58   : > { %807 = vmatmul.msk.f32.gmra.mxu0 %vm243_vm0, %v217_v11  ;;  %823 = vmatmul.msk.f32.gmra.mxu3 %vm243_vm0, %v233_v42 }
  0x60   : > { %808 = vmatmul.msk.f32.gmra.mxu0 %vm243_vm0, %v218_v16  ;;  %824 = vmatmul.msk.f32.gmra.mxu3 %vm243_vm0, %v234_v46 }
  0x68   : > { %809 = vmatmul.msk.f32.gmra.mxu0 %vm243_vm0, %v219_v21  ;;  %825 = vmatmul.msk.f32.gmra.mxu3 %vm243_vm0, %v235_v48 }
  0x70   : > { %810 = vmatmul.msk.f32.gmra.mxu0 %vm243_vm0, %v220_v27  ;;  %826 = vmatmul.msk.f32.gmra.mxu3 %vm243_vm0, %v236_v51 }
  0x78   : > { %811 = vmatmul.msk.f32.gmra.mxu0 %vm243_vm0, %v221_v32  ;;  %827 = vmatmul.msk.f32.gmra.mxu3 %vm243_vm0, %v237_v53 }
  0x80   : > { %812 = vmatmul.msk.f32.gmra.mxu0 %vm243_vm0, %v222_v34  ;;  %828 = vmatmul.msk.f32.gmra.mxu3 %vm243_vm0, %v238_v56 }
  0x88   : > { %813 = vmatmul.msk.f32.gmra.mxu0 %vm243_vm0, %v223_v36  ;;  %829 = vmatmul.msk.f32.gmra.mxu3 %vm243_vm0, %v239_v58 }
  0x90   : > { %814 = vmatmul.msk.f32.gmra.mxu0 %vm243_vm0, %v224_v38  ;;  %830 = vmatmul.msk.f32.gmra.mxu3 %vm243_vm0, %v240_v61 }
  0x95   : > { %v357_v40 = vpop.f32.mrf.mxu0 }
  0x96   : > { %549 = vmatmul.f32.vlgmr.msra.gmra.mxu1 %v357_v40 }
  0x98   : > { %815 = vmatmul.msk.f32.gmra.mxu0 %vm243_vm0, %v225_v41 }
  0x9d   : > { %v360_v43 = vpop.f32.mrf.mxu0 }
  0x9e   : > { %v842_v45 = vpack.c.bf16 %v360_v43, %v357_v40  ;;  %552 = vmatmul.f32.gmra.mxu1 %v360_v43 }
  0xa0   : > { %843 = vst [vmem:[%s1266_s22] sm:$0xff] %v842_v45   ;;  %816 = vmatmul.msk.f32.gmra.mxu0 %vm243_vm0, %v226_v44 }
  0xa5   : > { %v363_v47 = vpop.f32.mrf.mxu0 }
  0xa6   : > { %555 = vmatmul.f32.gmra.mxu1 %v363_v47 }
  0xaa   : > { %v411_v3 = vpop.f32.mrf.mxu3 }
  0xad   : > { %v366_v49 = vpop.f32.mrf.mxu0 }
  0xae   : > { %v847_v50 = vpack.c.bf16 %v366_v49, %v363_v47  ;;  %558 = vmatmul.f32.gmra.mxu1 %v366_v49 }
  0xb0   : > { %919 = vst [vmem:[%s1266_s22 + $0x8] sm:$0xff] %v847_v50  }
  0xb3   : > { %v414_v6 = vpop.f32.mrf.mxu3 }
  0xb4   : > { %v887_v7 = vpack.c.bf16 %v414_v6, %v411_v3 }
  0xb5   : > { %v369_v52 = vpop.f32.mrf.mxu0 }
  0xb6   : > { %561 = vmatmul.f32.gmra.mxu1 %v369_v52  ;;  %927 = vst [vmem:[%s1266_s22 + $0x48] sm:$0xff] %v887_v7  }
  0xbb   : > { %v417_v9 = vpop.f32.mrf.mxu3 }
  0xbd   : > { %v372_v54 = vpop.f32.mrf.mxu0 }
  0xbe   : > { %v852_v55 = vpack.c.bf16 %v372_v54, %v369_v52  ;;  %564 = vmatmul.f32.gmra.mxu1 %v372_v54 }
  0xc0   : > { %920 = vst [vmem:[%s1266_s22 + $0x10] sm:$0xff] %v852_v55  }
  0xc3   : > { %v420_v12 = vpop.f32.mrf.mxu3 }
  0xc4   : > { %v892_v13 = vpack.c.bf16 %v420_v12, %v417_v9 }
  0xc5   : > { %v375_v57 = vpop.f32.mrf.mxu0 }
  0xc6   : > { %567 = vmatmul.f32.gmra.mxu1 %v375_v57  ;;  %928 = vst [vmem:[%s1266_s22 + $0x50] sm:$0xff] %v892_v13  }
  0xcb   : > { %v423_v15 = vpop.f32.mrf.mxu3 }
  0xcd   : > { %v378_v59 = vpop.f32.mrf.mxu0 }
  0xce   : > { %v857_v60 = vpack.c.bf16 %v378_v59, %v375_v57  ;;  %570 = vmatmul.f32.gmra.mxu1 %v378_v59 }
  0xd0   : > { %921 = vst [vmem:[%s1266_s22 + $0x18] sm:$0xff] %v857_v60  }
  0xd3   : > { %v426_v19 = vpop.f32.mrf.mxu3 }
  0xd4   : > { %v897_v20 = vpack.c.bf16 %v426_v19, %v423_v15 }
  0xd5   : > { %v381_v62 = vpop.f32.mrf.mxu0 }
  0xd6   : > { %573 = vmatmul.f32.gmra.mxu1 %v381_v62  ;;  %929 = vst [vmem:[%s1266_s22 + $0x58] sm:$0xff] %v897_v20  }
  0xdb   : > { %v429_v23 = vpop.f32.mrf.mxu3 }
  0xdd   : > { %v384_v63 = vpop.f32.mrf.mxu0 }
  0xde   : > { %v862_v0 = vpack.c.bf16 %v384_v63, %v381_v62  ;;  %576 = vmatmul.f32.gmra.mxu1 %v384_v63 }
  0xe0   : > { %922 = vst [vmem:[%s1266_s22 + $0x20] sm:$0xff] %v862_v0  }
  0xe3   : > { %v432_v26 = vpop.f32.mrf.mxu3 }
  0xe4   : > { %v902_v27 = vpack.c.bf16 %v432_v26, %v429_v23 }
  0xe5   : > { %v387_v1 = vpop.f32.mrf.mxu0 }
  0xe6   : > { %579 = vmatmul.f32.gmra.mxu1 %v387_v1  ;;  %930 = vst [vmem:[%s1266_s22 + $0x60] sm:$0xff] %v902_v27  }
  0xeb   : > { %v435_v29 = vpop.f32.mrf.mxu3 }
  0xed   : > { %v390_v2 = vpop.f32.mrf.mxu0 }
  0xee   : > { %v867_v4 = vpack.c.bf16 %v390_v2, %v387_v1  ;;  %582 = vmatmul.f32.gmra.mxu1 %v390_v2 }
  0xf0   : > { %923 = vst [vmem:[%s1266_s22 + $0x28] sm:$0xff] %v867_v4  }
  0xf3   : > { %v438_v31 = vpop.f32.mrf.mxu3 }
  0xf4   : > { %v907_v32 = vpack.c.bf16 %v438_v31, %v435_v29 }
  0xf5   : > { %v393_v5 = vpop.f32.mrf.mxu0 }
  0xf6   : > { %585 = vmatmul.f32.gmra.mxu1 %v393_v5  ;;  %931 = vst [vmem:[%s1266_s22 + $0x68] sm:$0xff] %v907_v32  }
  0xfb   : > { %v441_v34 = vpop.f32.mrf.mxu3 }
  0xfd   : > { %v396_v8 = vpop.f32.mrf.mxu0 }
  0xfe   : > { %v872_v10 = vpack.c.bf16 %v396_v8, %v393_v5  ;;  %588 = vmatmul.f32.gmra.mxu1 %v396_v8 }
 0x100   : > { %924 = vst [vmem:[%s1266_s22 + $0x30] sm:$0xff] %v872_v10  }
 0x103   : > { %v444_v36 = vpop.f32.mrf.mxu3 }
 0x104   : > { %v912_v37 = vpack.c.bf16 %v444_v36, %v441_v34 }
 0x105   : > { %v399_v11 = vpop.f32.mrf.mxu0 }
 0x106   : > { %591 = vmatmul.f32.gmra.mxu1 %v399_v11  ;;  %932 = vst [vmem:[%s1266_s22 + $0x70] sm:$0xff] %v912_v37  }
 0x10b   : > { %v447_v39 = vpop.f32.mrf.mxu3 }
 0x10c   : > { %639 = vmatmul.f32.vlgmr.msrb.gmra.mxu3 %v447_v39 }
 0x10d   : > { %v402_v14 = vpop.f32.mrf.mxu0 }
 0x10e   : > { %v877_v16 = vpack.c.bf16 %v402_v14, %v399_v11  ;;  %594 = vmatmul.f32.vlgmr.msra.gmra.mxu2 %v402_v14 }
 0x110   : > { %925 = vst [vmem:[%s1266_s22 + $0x38] sm:$0xff] %v877_v16  }
 0x113   : > { %v550_v17 = vpop.f32.mrf.mxu1  ;;  %v450_v41 = vpop.f32.mrf.mxu3 }
 0x114   : > { %647 = vst.msk [vmem:[%s1298_s27] sm:$0xff] %vm646_vm1, %v550_v17  ;;  %v917_v42 = vpack.c.bf16 %v450_v41, %v447_v39  ;;  %642 = vmatmul.f32.gmra.mxu3 %v450_v41 }
 0x115   : > { %v405_v18 = vpop.f32.mrf.mxu0 }
 0x116   : > { %597 = vmatmul.f32.gmra.mxu2 %v405_v18  ;;  %933 = vst [vmem:[%s1266_s22 + $0x78] sm:$0xff] %v917_v42  }
 0x11b   : > { %v553_v21 = vpop.f32.mrf.mxu1 }
 0x11c   : > { %648 = vst.msk [vmem:[%s1298_s27 + $0x8] sm:$0xff] %vm646_vm1, %v553_v21 }
 0x11d   : > { %v408_v22 = vpop.f32.mrf.mxu0 }
 0x11e   : > { %v882_v24 = vpack.c.bf16 %v408_v22, %v405_v18  ;;  %600 = vmatmul.f32.gmra.mxu2 %v408_v22 }
 0x120   : > { %926 = vst [vmem:[%s1266_s22 + $0x40] sm:$0xff] %v882_v24  }
 0x123   : > { %v556_v25 = vpop.f32.mrf.mxu1 }
 0x124   : > { %649 = vst.msk [vmem:[%s1298_s27 + $0x10] sm:$0xff] %vm646_vm1, %v556_v25 }
 0x126   : > { %603 = vmatmul.f32.gmra.mxu2 %v411_v3 }
 0x12b   : > { %v559_v28 = vpop.f32.mrf.mxu1 }
 0x12c   : > { %650 = vst.msk [vmem:[%s1298_s27 + $0x18] sm:$0xff] %vm646_vm1, %v559_v28 }
 0x12e   : > { %606 = vmatmul.f32.gmra.mxu2 %v414_v6 }
 0x133   : > { %v562_v30 = vpop.f32.mrf.mxu1 }
 0x134   : > { %651 = vst.msk [vmem:[%s1298_s27 + $0x20] sm:$0xff] %vm646_vm1, %v562_v30 }
 0x136   : > { %609 = vmatmul.f32.gmra.mxu2 %v417_v9 }
 0x13b   : > { %v565_v33 = vpop.f32.mrf.mxu1 }
 0x13c   : > { %652 = vst.msk [vmem:[%s1298_s27 + $0x28] sm:$0xff] %vm646_vm1, %v565_v33 }
 0x13e   : > { %612 = vmatmul.f32.gmra.mxu2 %v420_v12 }
 0x143   : > { %v568_v35 = vpop.f32.mrf.mxu1 }
 0x144   : > { %653 = vst.msk [vmem:[%s1298_s27 + $0x30] sm:$0xff] %vm646_vm1, %v568_v35 }
 0x146   : > { %615 = vmatmul.f32.gmra.mxu2 %v423_v15 }
 0x14b   : > { %v571_v38 = vpop.f32.mrf.mxu1 }
 0x14c   : > { %654 = vst.msk [vmem:[%s1298_s27 + $0x38] sm:$0xff] %vm646_vm1, %v571_v38 }
 0x14e   : > { %618 = vmatmul.f32.gmra.mxu2 %v426_v19 }
 0x153   : > { %v574_v40 = vpop.f32.mrf.mxu1 }
 0x154   : > { %655 = vst.msk [vmem:[%s1298_s27 + $0x40] sm:$0xff] %vm646_vm1, %v574_v40 }
 0x156   : > { %621 = vmatmul.f32.gmra.mxu2 %v429_v23 }
 0x15b   : > { %v577_v43 = vpop.f32.mrf.mxu1 }
 0x15c   : > { %656 = vst.msk [vmem:[%s1298_s27 + $0x48] sm:$0xff] %vm646_vm1, %v577_v43 }
 0x15e   : > { %624 = vmatmul.f32.gmra.mxu2 %v432_v26 }
 0x163   : > { %v580_v44 = vpop.f32.mrf.mxu1 }
 0x164   : > { %657 = vst.msk [vmem:[%s1298_s27 + $0x50] sm:$0xff] %vm646_vm1, %v580_v44 }
 0x166   : > { %627 = vmatmul.f32.gmra.mxu2 %v435_v29 }
 0x16b   : > { %v583_v45 = vpop.f32.mrf.mxu1 }
 0x16c   : > { %658 = vst.msk [vmem:[%s1298_s27 + $0x58] sm:$0xff] %vm646_vm1, %v583_v45 }
 0x16e   : > { %630 = vmatmul.f32.gmra.mxu2 %v438_v31 }
 0x173   : > { %v586_v46 = vpop.f32.mrf.mxu1 }
 0x174   : > { %659 = vst.msk [vmem:[%s1298_s27 + $0x60] sm:$0xff] %vm646_vm1, %v586_v46 }
 0x176   : > { %633 = vmatmul.f32.gmra.mxu2 %v441_v34 }
 0x17b   : > { %v589_v47 = vpop.f32.mrf.mxu1 }
 0x17c   : > { %660 = vst.msk [vmem:[%s1298_s27 + $0x68] sm:$0xff] %vm646_vm1, %v589_v47 }
 0x17e   : > { %636 = vmatmul.f32.gmra.mxu2 %v444_v36 }
 0x183   : > { %v592_v48 = vpop.f32.mrf.mxu1 }
 0x184   : > { %1036 = shalt.err (!%p1033_p3)
}
 0x185   : > { %s1073_s14 = smov 64   ;;  %s1074_s22 = smov 4   ;;  %661 = vst.msk [vmem:[%s1298_s27 + $0x70] sm:$0xff] %vm646_vm1, %v592_v48 }
 0x186   : > { %968 = dma.vmem_to_hbm [thread:$0]  (%p1138_p5), %s698_s30, 2048, %s700_s7, %s680_s8, %s1073_s14, %s1073_s14, %s1074_s22  }
 0x18f   : > { %v640_v59 = vpop.f32.mrf.mxu3 }
 0x190   : > { %677 = vst.msk [vmem:[%s1298_s27 + $0xf0] sm:$0xff] %vm646_vm1, %v640_v59 }
 0x191   : > { %v595_v49 = vpop.f32.mrf.mxu2 }
 0x192   : > { %662 = vst.msk [vmem:[%s1298_s27 + $0x78] sm:$0xff] %vm646_vm1, %v595_v49 }
 0x197   : > { %v643_v61 = vpop.f32.mrf.mxu3 }
 0x198   : > { %678 = vst.msk [vmem:[%s1298_s27 + $0xf8] sm:$0xff] %vm646_vm1, %v643_v61 }
 0x199   : > { %v598_v50 = vpop.f32.mrf.mxu2 }
 0x19a   : > { %663 = vst.msk [vmem:[%s1298_s27 + $0x80] sm:$0xff] %vm646_vm1, %v598_v50 }
 0x1a1   : > { %v601_v51 = vpop.f32.mrf.mxu2 }
 0x1a2   : > { %664 = vst.msk [vmem:[%s1298_s27 + $0x88] sm:$0xff] %vm646_vm1, %v601_v51 }
 0x1a9   : > { %v604_v52 = vpop.f32.mrf.mxu2 }
 0x1aa   : > { %665 = vst.msk [vmem:[%s1298_s27 + $0x90] sm:$0xff] %vm646_vm1, %v604_v52 }
 0x1b1   : > { %v607_v53 = vpop.f32.mrf.mxu2 }
 0x1b2   : > { %666 = vst.msk [vmem:[%s1298_s27 + $0x98] sm:$0xff] %vm646_vm1, %v607_v53 }
 0x1b9   : > { %v610_v54 = vpop.f32.mrf.mxu2 }
 0x1ba   : > { %667 = vst.msk [vmem:[%s1298_s27 + $0xa0] sm:$0xff] %vm646_vm1, %v610_v54 }
 0x1c1   : > { %v613_v55 = vpop.f32.mrf.mxu2 }
 0x1c2   : > { %668 = vst.msk [vmem:[%s1298_s27 + $0xa8] sm:$0xff] %vm646_vm1, %v613_v55 }
 0x1c9   : > { %v616_v56 = vpop.f32.mrf.mxu2 }
 0x1ca   : > { %669 = vst.msk [vmem:[%s1298_s27 + $0xb0] sm:$0xff] %vm646_vm1, %v616_v56 }
 0x1d1   : > { %v619_v57 = vpop.f32.mrf.mxu2 }
 0x1d2   : > { %670 = vst.msk [vmem:[%s1298_s27 + $0xb8] sm:$0xff] %vm646_vm1, %v619_v57 }
 0x1d9   : > { %v622_v58 = vpop.f32.mrf.mxu2 }
 0x1da   : > { %671 = vst.msk [vmem:[%s1298_s27 + $0xc0] sm:$0xff] %vm646_vm1, %v622_v58 }
 0x1e1   : > { %v625_v60 = vpop.f32.mrf.mxu2 }
 0x1e2   : > { %672 = vst.msk [vmem:[%s1298_s27 + $0xc8] sm:$0xff] %vm646_vm1, %v625_v60 }
 0x1e9   : > { %v628_v62 = vpop.f32.mrf.mxu2 }
 0x1ea   : > { %673 = vst.msk [vmem:[%s1298_s27 + $0xd0] sm:$0xff] %vm646_vm1, %v628_v62 }
 0x1f1   : > { %v631_v63 = vpop.f32.mrf.mxu2 }
 0x1f2   : > { %674 = vst.msk [vmem:[%s1298_s27 + $0xd8] sm:$0xff] %vm646_vm1, %v631_v63 }
 0x1f9   : > { %v634_v0 = vpop.f32.mrf.mxu2 }
 0x1fa   : > { %675 = vst.msk [vmem:[%s1298_s27 + $0xe0] sm:$0xff] %vm646_vm1, %v634_v0 }
 0x201   : > { %v637_v1 = vpop.f32.mrf.mxu2 }
 0x202   : > { %676 = vst.msk [vmem:[%s1298_s27 + $0xe8] sm:$0xff] %vm646_vm1, %v637_v1 }
 0x203 PF: > { %p974_p4 = scmp.ge.s32.totalorder %s1071_s18, 2  ;;  %s717_s25 = sand.u32 1, %s1059_s15  }
 0x204   : > { %s718_s23 = scalar_lea.sflag [#allocation3], %s717_s25 }
 0x205   : > { %p971_p5 = pnand %p974_p4, %p1142_p6 }
 0x207   : > { %p972_p7 = pneg %p971_p5 }
 0x209   : > { %1054 = dma.done.wait (%p972_p7), %s718_s23, 2048  }
 0x20a   : > { %1056 = vsyncadd (%p972_p7), %s718_s23, 4294965248  ;;  %p15_p8 = scmp.ge.s32.totalorder %s1125_s21, 4   ;;  %s1411_s15 = smov %s1063_s16 }
 0x20b   : > { %s1412_s16 = smov %s1067_s17  ;;  %s1413_s17 = smov %s1136_s24 }
 0x20c   : > { %s1414_s18 = smov %s1125_s21  ;;  %17 = sbr.rel (!%p15_p8) target bundleno = 3 (0x3), region = 79 }
 0x211   :  { %732 = vsyncpa [#allocation3], 1 }
 0x212   :  { %734 = vsyncpa [#allocation3 + $0x1], 1 }

</bundles_post_ra>
